<compile_context>
chip_gen: v7x
topology: tpu7x:2x2x1
jax: 0.10.0
libtpu: 0.0.40
codegen_flags: <defaults>
</compile_context>

<pallas_src>
import functools

import jax
import jax.numpy as jnp
from jax import lax
from jax.experimental import pallas as pl
from jax.experimental.pallas import tpu as pltpu


def _dice_partials_kernel(x_ref, t_ref, inter_ref, psum_ref, *,
                          num_classes, apply_softmax, needs_mask,
                          hw_total, hw_tile):
    """Accumulates per-(B, C) intersection and prob-sum partials for one outer chunk.

    x_ref:  (B, C, hw_tile) logits (f32 path) or probabilities.
    t_ref:  (B, hw_tile) int8 labels; padded tail holds -1 (never matches).
    inter_ref / psum_ref: (1, B, C) f32 outputs, revisited across the inner
    (reduction) grid axis and used directly as accumulators.
    """
    inner = pl.program_id(1)

    @pl.when(inner == 0)
    def _init():
        inter_ref[...] = jnp.zeros_like(inter_ref)
        psum_ref[...] = jnp.zeros_like(psum_ref)

    x = x_ref[...].astype(jnp.float32)                    # (B, C, T)

    if apply_softmax:
        m = jnp.max(x, axis=1, keepdims=True)             # (B, 1, T) sublane reduce
        e = jnp.exp(x - m)                                # EUP
        denom = jnp.sum(e, axis=1, keepdims=True)         # (B, 1, T)
        probs = e * (1.0 / denom)                         # exact; divide is 1/C of tile
    else:
        probs = x

    # Intersection: select, not one-hot-cast + multiply.
    t = t_ref[...].astype(jnp.int32)                      # (B, T)
    class_ids = lax.broadcasted_iota(jnp.int32, (1, num_classes, 1), 1)
    match = t[:, None, :] == class_ids                    # (B, C, T) bool
    p_sel = jnp.where(match, probs, 0.0)
    inter_ref[...] += jnp.sum(p_sel, axis=2)[None]        # (1, B, C)

    # Union prob-sum: only tiles overlapping the padded tail pay for the mask.
    if needs_mask:
        base = (pl.program_id(0) * pl.num_programs(1) + inner) * hw_tile
        overlaps_pad = base + hw_tile > hw_total

        @pl.when(overlaps_pad)
        def _tail():
            lane = lax.broadcasted_iota(jnp.int32, (1, 1, hw_tile), 2)
            valid = (base + lane) < hw_total
            psum_ref[...] += jnp.sum(jnp.where(valid, probs, 0.0), axis=2)[None]

        @pl.when(jnp.logical_not(overlaps_pad))
        def _full():
            psum_ref[...] += jnp.sum(probs, axis=2)[None]
    else:
        psum_ref[...] += jnp.sum(probs, axis=2)[None]


def _round_up(v, m):
    return ((v + m - 1) // m) * m


def _vmem_budgets():
    """Returns (block budget bytes, vmem_limit_bytes) branched on chip VMEM size."""
    try:
        cap = pltpu.get_tpu_info().vmem_capacity_bytes
    except Exception:  # conservative (v7x-safe) fallback
        cap = 64 * 1024 * 1024
    if cap >= 100 * 1024 * 1024:                    # v5e / v6e: 128 MiB physical
        return 56 * 1024 * 1024, 100 * 1024 * 1024
    return 26 * 1024 * 1024, 52 * 1024 * 1024       # v7x: 64 MiB physical


def _pick_hw_tile(B, C, HW, max_hw_tile, budget_bytes):
    c_pad = _round_up(C, 8)                         # f32 sublane padding of x block
    # Per-lane footprint: double-buffered x block + ~4 tile-shaped f32 temporaries
    # (upcast copy, exp, probs, selected probs) at padded C, plus the
    # double-buffered int8 label block (sublane-padded to 32).
    bytes_per_lane = (2 + 4) * B * c_pad * 4 + 2 * _round_up(B, 32)
    tile = budget_bytes // bytes_per_lane
    tile = max(128, (tile // 128) * 128)
    if max_hw_tile is not None:
        tile = min(tile, max(128, (max_hw_tile // 128) * 128))
    tile = min(tile, _round_up(HW, 128))
    return tile


def dice_loss(inputs, targets, epsilon=1e-6, max_hw_tile=None, num_outer=2):
    """inputs: (B, C, H, W) f32 logits (softmax applied, mirroring the torch dtype
    switch) or pre-normalized probabilities in any other dtype.
    targets: (B, H, W) integer class labels in [0, C-1]."""
    B, C, H, W = inputs.shape
    HW = H * W
    apply_softmax = inputs.dtype == jnp.float32     # mirrors the torch dtype check

    x = inputs.reshape(B, C, HW)
    # int8 labels: 4x less label HBM traffic; C <= 127 and the -1 pad value fit.
    t = targets.astype(jnp.int8).reshape(B, HW)

    budget, vmem_limit = _vmem_budgets()
    hw_tile = _pick_hw_tile(B, C, HW, max_hw_tile, budget)

    n_tiles = -(-HW // hw_tile)
    n_outer = num_outer if n_tiles >= num_outer else 1
    n_inner = -(-n_tiles // n_outer)
    hw_padded = n_outer * n_inner * hw_tile
    needs_mask = hw_padded != HW
    if needs_mask:
        pad = hw_padded - HW
        x = jnp.pad(x, ((0, 0), (0, 0), (0, pad)))
        # Pad labels with -1 so padded pixels never match any class id.
        t = jnp.pad(t, ((0, 0), (0, pad)), constant_values=-1)

    kernel = functools.partial(
        _dice_partials_kernel,
        num_classes=C,
        apply_softmax=apply_softmax,
        needs_mask=needs_mask,
        hw_total=HW,
        hw_tile=hw_tile,
    )

    inter_p, psum_p = pl.pallas_call(
        kernel,
        out_shape=(
            jax.ShapeDtypeStruct((n_outer, B, C), jnp.float32),
            jax.ShapeDtypeStruct((n_outer, B, C), jnp.float32),
        ),
        grid_spec=pltpu.PrefetchScalarGridSpec(
            num_scalar_prefetch=0,
            grid=(n_outer, n_inner),
            in_specs=[
                pl.BlockSpec((B, C, hw_tile), lambda o, i: (0, 0, o * n_inner + i)),
                pl.BlockSpec((B, hw_tile), lambda o, i: (0, o * n_inner + i)),
            ],
            out_specs=[
                pl.BlockSpec((1, B, C), lambda o, i: (o, 0, 0)),
                pl.BlockSpec((1, B, C), lambda o, i: (o, 0, 0)),
            ],
        ),
        compiler_params=pltpu.CompilerParams(
            dimension_semantics=("parallel", "arbitrary"),  # outer chunks -> megacore
            vmem_limit_bytes=vmem_limit,
        ),
    )(x, t)

    # Tiny O(B*C) combine in plain JAX: per-class pixel counts, dice ratio, mean.
    # (Out-of-range labels silently contribute nothing, matching the kernel.)
    inter = jnp.sum(inter_p, axis=0)                                     # (B, C)
    psum = jnp.sum(psum_p, axis=0)                                       # (B, C)
    t32 = targets.astype(jnp.int32).reshape(B, 1, HW)
    counts = jnp.sum(
        (t32 == jnp.arange(C, dtype=jnp.int32)[None, :, None]).astype(jnp.float32),
        axis=2)                                                          # (B, C)
    union = psum + counts
    dice = (2.0 * inter + epsilon) / (union + epsilon)
    return jnp.mean(1.0 - dice)


def _dice_loss_ref(inputs, targets, epsilon=1e-6):
    # Pure-JAX reference mirroring the PyTorch module, for sanity checking.
    B, C, H, W = inputs.shape
    p = jax.nn.softmax(inputs, axis=1) if inputs.dtype == jnp.float32 else inputs
    p = p.astype(jnp.float32)
    onehot = jax.nn.one_hot(targets, C, dtype=jnp.float32)               # (B, H, W, C)
    onehot = jnp.transpose(onehot, (0, 3, 1, 2))                         # (B, C, H, W)
    inter = jnp.sum(p * onehot, axis=(2, 3))                             # (B, C)
    union = jnp.sum(p + onehot, axis=(2, 3))                             # (B, C)
    dice = (2.0 * inter + epsilon) / (union + epsilon)
    return jnp.mean(1.0 - dice)


if __name__ == "__main__":
    num_classes = 9
    B = 2

    key = jax.random.PRNGKey(0)
    k_x, k_t = jax.random.split(key)

    def _check(H, W, max_hw_tile=None, tol=1e-4):
        inputs = jax.random.normal(k_x, (B, num_classes, H, W), dtype=jnp.float32)
        targets = jax.random.randint(k_t, (B, H, W), 0, num_classes, dtype=jnp.int32)
        ref = jax.block_until_ready(_dice_loss_ref(inputs, targets))
        out = jax.block_until_ready(dice_loss(inputs, targets, max_hw_tile=max_hw_tile))
        assert jnp.allclose(out, ref, atol=tol, rtol=tol), (H, W, max_hw_tile, out, ref)

    _check(16, 16)                      # single tile, single chunk
    _check(16, 16, max_hw_tile=128)     # 2 tiles -> parallel outer axis exercised
    _check(12, 12, max_hw_tile=128)     # HW=144 -> padded-tail masking path
    _check(18, 18, max_hw_tile=128)     # HW=324 -> odd tile count, fully-padded tile

    print("KERNEL_OK")
</pallas_src>

<mosaic_0001>
module attributes {stable_mosaic.version = 11 : i64} {
  func.func @_dice_partials_kernel(%arg0: i32, %arg1: i32, %arg2: memref<2x9x256xf32, #tpu.memory_space<vmem>>, %arg3: memref<2x256xi8, #tpu.memory_space<vmem>>, %arg4: memref<1x2x9xf32, #tpu.memory_space<vmem>>, %arg5: memref<1x2x9xf32, #tpu.memory_space<vmem>>) attributes {dimension_semantics = [#tpu.dimension_semantics<parallel>, #tpu.dimension_semantics<arbitrary>], iteration_bounds = array<i64: 1, 1>, scalar_prefetch = 0 : i64, scratch_operands = 0 : i64, tpu.core_type = #tpu.core_type<tc>, window_params = [{transform_indices = @transform_0, window_bounds = array<i64: 2, 9, 256>}, {transform_indices = @transform_1, window_bounds = array<i64: 2, 256>}, {transform_indices = @transform_2, window_bounds = array<i64: 1, 2, 9>}, {transform_indices = @transform_3, window_bounds = array<i64: 1, 2, 9>}]} {
    %c0_i32 = arith.constant 0 : i32
    %0 = arith.cmpi eq, %arg1, %c0_i32 : i32
    %1 = arith.extui %0 : i1 to i32
    %c0_i32_0 = arith.constant 0 : i32
    %2 = arith.cmpi ne, %1, %c0_i32_0 : i32
    scf.if %2 {
      %cst_22 = arith.constant 0.000000e+00 : f32
      %34 = vector.broadcast %cst_22 : f32 to vector<1x2x9xf32>
      %c0_23 = arith.constant 0 : index
      %c0_24 = arith.constant 0 : index
      %c0_25 = arith.constant 0 : index
      %35 = vector.load %arg4[%c0_23, %c0_24, %c0_25] : memref<1x2x9xf32, #tpu.memory_space<vmem>>, vector<1x2x9xf32>
      tpu.vector_store %arg4[%c0_23, %c0_24, %c0_25], %34 {strides = array<i32>} : memref<1x2x9xf32, #tpu.memory_space<vmem>>, vector<1x2x9xf32>,
      %cst_26 = arith.constant 0.000000e+00 : f32
      %36 = vector.broadcast %cst_26 : f32 to vector<1x2x9xf32>
      %c0_27 = arith.constant 0 : index
      %c0_28 = arith.constant 0 : index
      %c0_29 = arith.constant 0 : index
      %37 = vector.load %arg5[%c0_27, %c0_28, %c0_29] : memref<1x2x9xf32, #tpu.memory_space<vmem>>, vector<1x2x9xf32>
      tpu.vector_store %arg5[%c0_27, %c0_28, %c0_29], %36 {strides = array<i32>} : memref<1x2x9xf32, #tpu.memory_space<vmem>>, vector<1x2x9xf32>,
    } else {
    }
    %c0 = arith.constant 0 : index
    %c0_1 = arith.constant 0 : index
    %c0_2 = arith.constant 0 : index
    %3 = vector.load %arg2[%c0, %c0_1, %c0_2] : memref<2x9x256xf32, #tpu.memory_space<vmem>>, vector<2x9x256xf32>
    %cst = arith.constant dense<0xFF800000> : vector<2x256xf32>
    %4 = vector.multi_reduction <maximumf>, %3, %cst [1] : vector<2x9x256xf32> to vector<2x256xf32>
    %5 = vector.shape_cast %4 : vector<2x256xf32> to vector<2x1x256xf32>
    %6 = vector.broadcast %5 : vector<2x1x256xf32> to vector<2x9x256xf32>
    %7 = arith.subf %3, %6 : vector<2x9x256xf32>
    %8 = math.exp %7 : vector<2x9x256xf32>
    %cst_3 = arith.constant dense<0.000000e+00> : vector<2x256xf32>
    %9 = vector.multi_reduction <add>, %8, %cst_3 [1] : vector<2x9x256xf32> to vector<2x256xf32>
    %10 = vector.shape_cast %9 : vector<2x256xf32> to vector<2x1x256xf32>
    %cst_4 = arith.constant 1.000000e+00 : f32
    %11 = vector.broadcast %cst_4 : f32 to vector<2x1x256xf32>
    %12 = arith.divf %11, %10 : vector<2x1x256xf32>
    %13 = vector.broadcast %12 : vector<2x1x256xf32> to vector<2x9x256xf32>
    %14 = arith.mulf %8, %13 : vector<2x9x256xf32>
    %c0_5 = arith.constant 0 : index
    %c0_6 = arith.constant 0 : index
    %15 = vector.load %arg3[%c0_5, %c0_6] : memref<2x256xi8, #tpu.memory_space<vmem>>, vector<2x256xi8>
    %16 = arith.extsi %15 : vector<2x256xi8> to vector<2x256xi32>
    %17 = tpu.iota {dimensions = array<i32: 1>} : vector<1x9x1xi32>
    %18 = vector.shape_cast %16 : vector<2x256xi32> to vector<2x1x256xi32>
    %19 = vector.broadcast %18 : vector<2x1x256xi32> to vector<2x9x256xi32>
    %20 = vector.broadcast %17 : vector<1x9x1xi32> to vector<2x9x256xi32>
    %21 = arith.cmpi eq, %19, %20 : vector<2x9x256xi32>
    %cst_7 = arith.constant 0.000000e+00 : f32
    %22 = vector.broadcast %cst_7 : f32 to vector<2x9x256xf32>
    %23 = arith.select %21, %14, %22 : vector<2x9x256xi1>, vector<2x9x256xf32>
    %c0_8 = arith.constant 0 : index
    %c0_9 = arith.constant 0 : index
    %c0_10 = arith.constant 0 : index
    %24 = vector.load %arg4[%c0_8, %c0_9, %c0_10] : memref<1x2x9xf32, #tpu.memory_space<vmem>>, vector<1x2x9xf32>
    %cst_11 = arith.constant dense<0.000000e+00> : vector<2x9xf32>
    %25 = vector.multi_reduction <add>, %23, %cst_11 [2] : vector<2x9x256xf32> to vector<2x9xf32>
    %26 = vector.shape_cast %25 : vector<2x9xf32> to vector<1x2x9xf32>
    %27 = arith.addf %24, %26 : vector<1x2x9xf32>
    %c0_12 = arith.constant 0 : index
    %c0_13 = arith.constant 0 : index
    %c0_14 = arith.constant 0 : index
    %28 = vector.load %arg4[%c0_12, %c0_13, %c0_14] : memref<1x2x9xf32, #tpu.memory_space<vmem>>, vector<1x2x9xf32>
    tpu.vector_store %arg4[%c0_12, %c0_13, %c0_14], %27 {strides = array<i32>} : memref<1x2x9xf32, #tpu.memory_space<vmem>>, vector<1x2x9xf32>,
    %c0_15 = arith.constant 0 : index
    %c0_16 = arith.constant 0 : index
    %c0_17 = arith.constant 0 : index
    %29 = vector.load %arg5[%c0_15, %c0_16, %c0_17] : memref<1x2x9xf32, #tpu.memory_space<vmem>>, vector<1x2x9xf32>
    %cst_18 = arith.constant dense<0.000000e+00> : vector<2x9xf32>
    %30 = vector.multi_reduction <add>, %14, %cst_18 [2] : vector<2x9x256xf32> to vector<2x9xf32>
    %31 = vector.shape_cast %30 : vector<2x9xf32> to vector<1x2x9xf32>
    %32 = arith.addf %29, %31 : vector<1x2x9xf32>
    %c0_19 = arith.constant 0 : index
    %c0_20 = arith.constant 0 : index
    %c0_21 = arith.constant 0 : index
    %33 = vector.load %arg5[%c0_19, %c0_20, %c0_21] : memref<1x2x9xf32, #tpu.memory_space<vmem>>, vector<1x2x9xf32>
    tpu.vector_store %arg5[%c0_19, %c0_20, %c0_21], %32 {strides = array<i32>} : memref<1x2x9xf32, #tpu.memory_space<vmem>>, vector<1x2x9xf32>,
    return
  }
  func.func @transform_0(%arg0: i32, %arg1: i32) -> (i32, i32, i32) {
    %c1_i32 = arith.constant 1 : i32
    %0 = arith.muli %arg0, %c1_i32 : i32
    %1 = arith.addi %0, %arg1 : i32
    %c0_i32 = arith.constant 0 : i32
    %c0_i32_0 = arith.constant 0 : i32
    %c0_i32_1 = arith.constant 0 : i32
    return %c0_i32, %c0_i32_0, %1 : i32, i32, i32
  }
  func.func @transform_1(%arg0: i32, %arg1: i32) -> (i32, i32) {
    %c1_i32 = arith.constant 1 : i32
    %0 = arith.muli %arg0, %c1_i32 : i32
    %1 = arith.addi %0, %arg1 : i32
    %c0_i32 = arith.constant 0 : i32
    %c0_i32_0 = arith.constant 0 : i32
    return %c0_i32, %1 : i32, i32
  }
  func.func @transform_2(%arg0: i32, %arg1: i32) -> (i32, i32, i32) {
    %c0_i32 = arith.constant 0 : i32
    %c0_i32_0 = arith.constant 0 : i32
    %c0_i32_1 = arith.constant 0 : i32
    return %arg0, %c0_i32, %c0_i32_0 : i32, i32, i32
  }
  func.func @transform_3(%arg0: i32, %arg1: i32) -> (i32, i32, i32) {
    %c0_i32 = arith.constant 0 : i32
    %c0_i32_0 = arith.constant 0 : i32
    %c0_i32_1 = arith.constant 0 : i32
    return %arg0, %c0_i32, %c0_i32_0 : i32, i32, i32
  }
}

</mosaic_0001>

<bundles_post_ra>
// kernel: tpu_custom_call.1
= control target key start
LH: loop header
LB: loop body
LE: loop exit
PB: predicated region body
PF: predicated region fallthrough
CT: control target
= control target key end

     0   :  { %9 = vsyncpa [#allocation3], 0  ;;  %vm71_vm0 = vcmask 1040384   ;;  %s589_s0 = inlined_call_operand.vmem [shape: f32[2,9,256], index: 0, kind: input, shape index: {}]   ;;  %s590_s1 = inlined_call_operand.vmem [shape: s8[2,256], index: 1, kind: input, shape index: {}]   ;;  %s591_s2 = inlined_call_operand.hbm [shape: f32[1,2,9], index: 2, kind: output, shape index: {0}]   ;;  %s592_s3 = inlined_call_operand.hbm [shape: f32[1,2,9], index: 3, kind: output, shape index: {1}]  }
   0x1   :  { %v63_v0 = vld [vmem:[%s589_s0] sm:$0xff]  ;;  %v64_v1 = vld [vmem:[%s589_s0 + $0x8] sm:$0xff]  ;;  %v65_v2 = vld [vmem:[%s589_s0 + $0x10] sm:$0x1] }
   0x2   :  { %v66_v3 = vld [vmem:[%s589_s0 + $0x18] sm:$0x1]  ;;  %v72_v4 = vsel %vm71_vm0, %v65_v2, -inf  ;;  %v67_v5 = vld [vmem:[%s589_s0 + $0x20] sm:$0xff]  ;;  %v68_v6 = vld [vmem:[%s589_s0 + $0x28] sm:$0xff] }
   0x3   :  { %v73_v7 = vmax.f32 %v63_v0, %v72_v4  ;;  %v80_v8 = vsel %vm71_vm0, %v66_v3, -inf  ;;  %v69_v9 = vld [vmem:[%s589_s0 + $0x30] sm:$0x1]  ;;  %v70_v10 = vld [vmem:[%s589_s0 + $0x38] sm:$0x1] }
   0x4   :  { %v81_v11 = vmax.f32 %v64_v1, %v80_v8  ;;  %v88_v12 = vsel %vm71_vm0, %v69_v9, -inf  ;;  %v96_v13 = vsel %vm71_vm0, %v70_v10, -inf }
   0x5   :  { %v74_v14 = vrot.slane %v73_v7, 4  ;;  %v89_v15 = vmax.f32 %v67_v5, %v88_v12  ;;  %v97_v16 = vmax.f32 %v68_v6, %v96_v13 }
   0x6   :  { %10 = vsyncpa [#allocation5], 0  ;;  %v82_v17 = vrot.slane %v81_v11, 4  ;;  %v178_v61 = vlaneseq  ;;  %v440_v62 = vmov 1966171168   ;;  %vm60_vm9 = vcmask 66560  }
   0x7   :  { %v75_v18 = vmax.f32 %v73_v7, %v74_v14  ;;  %v90_v19 = vrot.slane %v89_v15, 4  ;;  %v98_v20 = vrot.slane %v97_v16, 4  ;;  %v182_v63 = vunpack.c.l.s4 %v440_v62  ;;  %s443_s30 = smov [#allocation4]  }
   0x8   :  { %v83_v21 = vmax.f32 %v81_v11, %v82_v17  ;;  %vm267_vm10 = vcmask 130112   ;;  %vm278_vm11 = vcmask 1041409   ;;  %s343_s4 = sshll.u32 %s443_s30, 4  ;;  %s344_s4 = int_to_ptr.vmem [resolvable:$true] %s343_s4 }
   0x9   :  { %v76_v22 = vrot.slane %v75_v18, 2  ;;  %v91_v23 = vmax.f32 %v89_v15, %v90_v19  ;;  %v99_v24 = vmax.f32 %v97_v16, %v98_v20  ;;  %v183_v11 = vunpack.c.0.s8 %v182_v63  ;;  %v176_v15 = vld [vmem:[%s590_s1] sm:$0x3]  ;;  %s442_s1 = smov [#allocation2]  }
   0xa   :  { %v84_v25 = vrot.slane %v83_v21, 2  ;;  %s333_s29 = sshll.u32 %s442_s1, 4  ;;  %s334_s29 = int_to_ptr.vmem [resolvable:$true] %s333_s29 }
   0xb   :  { %v77_v26 = vmax.f32 %v75_v18, %v76_v22  ;;  %v92_v27 = vrot.slane %v91_v23, 2  ;;  %v100_v28 = vrot.slane %v99_v24, 2  ;;  %v177_v22 = vunpack.c.0.s8 %v176_v15  ;;  %s392_s5 = scalar_lea.vmem %s334_s29, 32  ;;  %p397_p1 = scmp.lt.s32.totalorder %s334_s29, %s334_s29 }
   0xc   :  { %v85_v29 = vmax.f32 %v83_v21, %v84_v25  ;;  %p393_p0 = scmp.ne.s32.totalorder %s334_s29, %s392_s5  ;;  %p398_p2 = scmp.lt.s32.totalorder %s392_s5, %s392_s5 }
   0xd   :  { %v78_v30 = vrot.slane %v77_v26, 1  ;;  %v93_v31 = vmax.f32 %v91_v23, %v92_v27  ;;  %v101_v32 = vmax.f32 %v99_v24, %v100_v28 }
   0xe   :  { %v86_v33 = vrot.slane %v85_v29, 1  ;;  %p399_p3 = por %p398_p2, %p397_p1 }
   0xf   :  { %v79_v34 = vmax.f32 %v77_v26, %v78_v30  ;;  %v94_v35 = vrot.slane %v93_v31, 1  ;;  %v102_v36 = vrot.slane %v101_v32, 1 }
  0x10   :  { %v87_v37 = vmax.f32 %v85_v29, %v86_v33  ;;  %p400_p4 = pnand %p399_p3, %p393_p0 }
  0x11   :  { %v104_v38 = vsub.f32 %v63_v0, %v79_v34  ;;  %v106_v39 = vsub.f32 %v65_v2, %v79_v34  ;;  %v95_v40 = vmax.f32 %v93_v31, %v94_v35  ;;  %v103_v41 = vmax.f32 %v101_v32, %v102_v36 }
  0x12   :  { %v105_v42 = vsub.f32 %v64_v1, %v87_v37  ;;  %v107_v43 = vsub.f32 %v66_v3, %v87_v37 }
  0x13   :  { %v112_v44 = vmul.f32 1.442695, %v104_v38  ;;  %v116_v45 = vmul.f32 1.442695, %v106_v39  ;;  %v108_v46 = vsub.f32 %v67_v5, %v95_v40  ;;  %v109_v47 = vsub.f32 %v68_v6, %v103_v41 }
  0x14   :  { %v114_v48 = vmul.f32 1.442695, %v105_v42  ;;  %v118_v49 = vmul.f32 1.442695, %v107_v43  ;;  %v110_v50 = vsub.f32 %v69_v9, %v95_v40  ;;  %v111_v51 = vsub.f32 %v70_v10, %v103_v41 }
  0x15   :  { %368 = vpow2.f32 %v112_v44  ;;  %v120_v52 = vmul.f32 1.442695, %v108_v46  ;;  %v122_v53 = vmul.f32 1.442695, %v109_v47  ;;  %v517_v10 = vshrl.u32 %v178_v61, 7 }
  0x16   :  { %370 = vpow2.f32 %v114_v48  ;;  %v124_v54 = vmul.f32 1.442695, %v110_v50  ;;  %v126_v55 = vmul.f32 1.442695, %v111_v51 }
  0x17   :  { %372 = vpow2.f32 %v116_v45  ;;  %v186_v23 = vsub.s32 %v183_v11, %v517_v10  ;;  %v205_v43 = vsub.s32 0, %v517_v10  ;;  %v209_v45 = vsub.s32 1, %v517_v10 }
  0x18   :  { %374 = vpow2.f32 %v118_v49  ;;  %v180_v48 = vadd.s32 8, %v517_v10 }
  0x19   :  { %376 = vpow2.f32 %v120_v52  ;;  %v187_v32 = vrot.slane %v177_v22, %v186_v23 }
  0x1a   :  { %378 = vpow2.f32 %v122_v53 }
  0x1b   :  { %380 = vpow2.f32 %v124_v54  ;;  %v188_v39 = vcombine.high %v187_v32, %v187_v32  ;;  %v195_v41 = vrot.slane %v187_v32, %v186_v23 }
  0x1c   :  { %382 = vpow2.f32 %v126_v55 }
  0x1d   :  { %v202_v44 = vrot.slane %v188_v39, %v186_v23  ;;  %v206_v46 = vrot.slane %v195_v41, %v205_v43  ;;  %v210_v47 = vrot.slane %v195_v41, %v209_v45 }
  0x1f   :  { %v492_v56 = vpop.eup %368  ;;  %v214_v49 = vrot.slane %v202_v44, %v205_v43  ;;  %v218_v51 = vrot.slane %v202_v44, %v209_v45  ;;  %vm219_vm1 = vcmp.eq.s32.totalorder %v206_v46, %v517_v10  ;;  %vm220_vm2 = vcmp.eq.s32.totalorder %v210_v47, %v517_v10 }
  0x20   :  { %v494_v57 = vpop.eup %370  ;;  %vm221_vm3 = vcmp.eq.s32.totalorder %v206_v46, %v180_v48  ;;  %vm222_vm4 = vcmp.eq.s32.totalorder %v210_v47, %v180_v48 }
  0x21   :  { %v496_v58 = vpop.eup %372  ;;  %vm223_vm5 = vcmp.eq.s32.totalorder %v214_v49, %v517_v10  ;;  %vm224_vm6 = vcmp.eq.s32.totalorder %v218_v51, %v517_v10  ;;  %vm225_vm7 = vcmp.eq.s32.totalorder %v214_v49, %v180_v48  ;;  %vm226_vm8 = vcmp.eq.s32.totalorder %v218_v51, %v180_v48 }
  0x22   :  { %v498_v59 = vpop.eup %374  ;;  %v128_v60 = vsel %vm71_vm0, %v496_v58, 0.0 }
  0x23   :  { %v502_v0 = vpop.eup %376  ;;  %v129_v1 = vadd.f32 %v492_v56, %v128_v60  ;;  %v136_v2 = vsel %vm71_vm0, %v498_v59, 0.0 }
  0x24   :  { %v507_v3 = vpop.eup %378  ;;  %v137_v4 = vadd.f32 %v494_v57, %v136_v2 }
  0x25   :  { %v510_v5 = vpop.eup %380  ;;  %v130_v6 = vrot.slane %v129_v1, 4 }
  0x26   :  { %v512_v7 = vpop.eup %382  ;;  %v138_v8 = vrot.slane %v137_v4, 4  ;;  %v144_v9 = vsel %vm71_vm0, %v510_v5, 0.0 }
  0x27   :  { %v131_v12 = vadd.f32 %v130_v6, %v129_v1  ;;  %v145_v13 = vadd.f32 %v502_v0, %v144_v9  ;;  %v152_v14 = vsel %vm71_vm0, %v512_v7, 0.0 }
  0x28   :  { %v139_v16 = vadd.f32 %v138_v8, %v137_v4  ;;  %v153_v17 = vadd.f32 %v507_v3, %v152_v14 }
  0x29   :  { %v132_v18 = vrot.slane %v131_v12, 2  ;;  %v146_v19 = vrot.slane %v145_v13, 4 }
  0x2a   :  { %v140_v20 = vrot.slane %v139_v16, 2  ;;  %v154_v21 = vrot.slane %v153_v17, 4 }
  0x2b   :  { %v133_v24 = vadd.f32 %v132_v18, %v131_v12  ;;  %v147_v25 = vadd.f32 %v146_v19, %v145_v13 }
  0x2c   :  { %v141_v26 = vadd.f32 %v140_v20, %v139_v16  ;;  %v155_v27 = vadd.f32 %v154_v21, %v153_v17 }
  0x2d   :  { %v134_v28 = vrot.slane %v133_v24, 1  ;;  %v148_v29 = vrot.slane %v147_v25, 2 }
  0x2e   :  { %v142_v30 = vrot.slane %v141_v26, 1  ;;  %v156_v31 = vrot.slane %v155_v27, 2 }
  0x2f   :  { %v135_v33 = vadd.f32 %v134_v28, %v133_v24  ;;  %v149_v34 = vadd.f32 %v148_v29, %v147_v25  ;;  %v441_v25 = vmov 0.0  }
  0x30   :  { %v143_v35 = vadd.f32 %v142_v30, %v141_v26  ;;  %v157_v36 = vadd.f32 %v156_v31, %v155_v27  ;;  %61 = vst.msk [vmem:[#allocation2] sm:$0x3] %vm60_vm9, %v441_v25  ;;  %62 = vst.msk [vmem:[#allocation4] sm:$0x3] %vm60_vm9, %v441_v25  ;;  %v257_v27 = vand.u32 127, %v178_v61 }
  0x31   :  { %384 = vrcp.f32 %v135_v33  ;;  %v150_v37 = vrot.slane %v149_v34, 1 }
  0x32   :  { %386 = vrcp.f32 %v143_v35  ;;  %v158_v38 = vrot.slane %v157_v36, 1  ;;  %v262_v29 = vadd.s32 4294967288, %v257_v27 }
  0x33   :  { %v151_v40 = vadd.f32 %v150_v37, %v149_v34  ;;  %v260_v34 = vsub.s32 %v257_v27, %v517_v10 }
  0x34   :  { %v159_v42 = vadd.f32 %v158_v38, %v157_v36  ;;  %v265_v31 = vsub.s32 %v262_v29, %v517_v10 }
  0x35   :  { %388 = vrcp.f32 %v151_v40 }
  0x36   :  { %390 = vrcp.f32 %v159_v42 }
  0x37   :  { %v235_v61 = vld [vmem:[#allocation2] sm:$0x3]  ;;  %v284_v49 = vld [vmem:[#allocation4] sm:$0x3] }
  0x3b   :  { %v385_v50 = vpop.eup %384 }
  0x3c   :  { %v387_v52 = vpop.eup %386  ;;  %v168_v53 = vmul.f32 %v385_v50, %v492_v56  ;;  %v170_v55 = vmul.f32 %v385_v50, %v496_v58 }
  0x3d   :  { %v169_v54 = vmul.f32 %v387_v52, %v494_v57  ;;  %v171_v60 = vmul.f32 %v387_v52, %v498_v59 }
  0x3e   :  { %v227_v62 = vsel %vm219_vm1, %v168_v53, 0.0  ;;  %v229_v4 = vsel %vm221_vm3, %v170_v55, 0.0  ;;  %v288_v14 = vsel %vm71_vm0, %v170_v55, 0.0 }
  0x3f   :  { %v389_v63 = vpop.eup %388  ;;  %v285_v1 = vadd.f32 %v169_v54, %v168_v53  ;;  %v228_v2 = vsel %vm220_vm2, %v169_v54, 0.0  ;;  %v230_v6 = vsel %vm222_vm4, %v171_v60, 0.0  ;;  %v239_v12 = vsel %vm71_vm0, %v229_v4, 0.0 }
  0x40   :  { %v391_v8 = vpop.eup %390  ;;  %v172_v56 = vmul.f32 %v389_v63, %v502_v0  ;;  %v236_v58 = vadd.f32 %v228_v2, %v227_v62  ;;  %v174_v59 = vmul.f32 %v389_v63, %v510_v5  ;;  %v240_v13 = vsel %vm71_vm0, %v230_v6, 0.0 }
  0x41   :  { %286 = vadd.xlane.f32.xlu0 %v285_v1  ;;  %v173_v57 = vmul.f32 %v391_v8, %v507_v3  ;;  %v175_v9 = vmul.f32 %v391_v8, %v512_v7  ;;  %v289_v15 = vsel %vm71_vm0, %v171_v60, 0.0  ;;  %v241_v18 = vadd.f32 %v240_v13, %v239_v12 }
  0x42   :  { %v231_v11 = vsel %vm223_vm5, %v172_v56, 0.0  ;;  %v233_v17 = vsel %vm225_vm7, %v174_v59, 0.0  ;;  %v290_v5 = vadd.f32 %v289_v15, %v288_v14  ;;  %v296_v22 = vsel %vm71_vm0, %v174_v59, 0.0 }
  0x43   :  { %v232_v0 = vsel %vm224_vm6, %v173_v57, 0.0  ;;  %v234_v3 = vsel %vm226_vm8, %v175_v9, 0.0  ;;  %v247_v7 = vsel %vm71_vm0, %v233_v17, 0.0  ;;  %v293_v20 = vadd.f32 %v173_v57, %v172_v56 }
  0x44   :  { %v244_v16 = vadd.f32 %v232_v0, %v231_v11  ;;  %v248_v19 = vsel %vm71_vm0, %v234_v3, 0.0  ;;  %v297_v23 = vsel %vm71_vm0, %v175_v9, 0.0 }
  0x45   :  { %237 = vadd.xlane.f32.xlu0 %v236_v58  ;;  %v249_v21 = vadd.f32 %v248_v19, %v247_v7  ;;  %v298_v24 = vadd.f32 %v297_v23, %v296_v22 }
  0x46   :  { %245 = vadd.xlane.f32.xlu1 %v244_v16 }
  0x49   :  { %242 = vadd.xlane.f32.xlu0 %v241_v18 }
  0x4a   :  { %291 = vadd.xlane.f32.xlu1 %v290_v5 }
  0x4d   :  { %294 = vadd.xlane.f32.xlu0 %v293_v20 }
  0x4e   :  { %250 = vadd.xlane.f32.xlu1 %v249_v21 }
  0x52   :  { %299 = vadd.xlane.f32.xlu1 %v298_v24 }
  0xce   :  { %v287_v26 = vpop.xlane.xlu0 %286 }
  0xcf   :  { %v308_v46 = vrot.slane %v287_v26, %v260_v34 }
  0xd2   :  { %v238_v28 = vpop.xlane.xlu0 %237 }
  0xd3   :  { %v246_v30 = vpop.xlane.xlu1 %245  ;;  %v261_v36 = vrot.slane %v238_v28, %v260_v34 }
  0xd4   :  { %v272_v39 = vrot.slane %v246_v30, %v260_v34 }
  0xd6   :  { %v243_v32 = vpop.xlane.xlu0 %242 }
  0xd7   :  { %v292_v33 = vpop.xlane.xlu1 %291  ;;  %v266_v35 = vrot.slane %v243_v32, %v265_v31 }
  0xd8   :  { %v312_v42 = vrot.slane %v292_v33, %v265_v31 }
  0xd9   :  { %v268_v40 = vsel %vm267_vm10, %v266_v35, %v261_v36 }
  0xda   :  { %v295_v38 = vpop.xlane.xlu0 %294  ;;  %v313_v50 = vsel %vm267_vm10, %v312_v42, %v308_v46 }
  0xdb   :  { %v251_v37 = vpop.xlane.xlu1 %250  ;;  %v317_v44 = vrot.slane %v295_v38, %v260_v34 }
  0xdc   :  { %v276_v41 = vrot.slane %v251_v37, %v265_v31 }
  0xde   :  { %v277_v43 = vsel %vm267_vm10, %v276_v41, %v272_v39 }
  0xdf   :  { %v300_v45 = vpop.xlane.xlu1 %299  ;;  %v279_v10 = vsel %vm278_vm11, %v277_v43, %v268_v40 }
  0xe0   :  { %v321_v47 = vrot.slane %v300_v45, %v265_v31  ;;  %v281_v48 = vadd.f32 %v279_v10, %v235_v61 }
  0xe2   :  { %v322_v51 = vsel %vm267_vm10, %v321_v47, %v317_v44  ;;  %283 = vst.msk [vmem:[#allocation2] sm:$0x3] %vm60_vm9, %v281_v48 }
  0xe3   :  { %v323_v52 = vsel %vm278_vm11, %v322_v51, %v313_v50 }
  0xe4   :  { %403 = shalt.err (!%p400_p4)
}
  0xe5   :  { %s404_s8 = scalar_lea.hbm %s591_s2, 32 }
  0xe6   :  { %p405_p5 = scmp.ne.s32.totalorder %s591_s2, %s404_s8  ;;  %p408_p6 = scmp.lt.u32.totalorder %s404_s8, %s591_s2 }
  0xe8   :  { %p410_p7 = pnand %p408_p6, %p405_p5 }
  0xea   :  { %413 = shalt.err (!%p410_p7)
}
  0xeb   :  { %336 = dma.vmem_to_hbm [thread:$0]  %s334_s29, 32, %s591_s2, [#allocation3]   ;;  %v325_v53 = vadd.f32 %v323_v52, %v284_v49 }
  0xec   :  { %s414_s15 = scalar_lea.vmem %s344_s4, 32  ;;  %p419_p9 = scmp.lt.s32.totalorder %s344_s4, %s344_s4 }
  0xed   :  { %326 = vst.msk [vmem:[#allocation4] sm:$0x3] %vm60_vm9, %v325_v53  ;;  %p415_p8 = scmp.ne.s32.totalorder %s344_s4, %s414_s15  ;;  %p420_p10 = scmp.lt.s32.totalorder %s414_s15, %s414_s15 }
  0xef   :  { %p421_p11 = por %p420_p10, %p419_p9 }
  0xf1   :  { %p422_p12 = pnand %p421_p11, %p415_p8 }
  0xf3   :  { %425 = shalt.err (!%p422_p12)
}
  0xf4   :  { %s426_s18 = scalar_lea.hbm %s592_s3, 32 }
  0xf5   :  { %p427_p13 = scmp.ne.s32.totalorder %s592_s3, %s426_s18  ;;  %p430_p0 = scmp.lt.u32.totalorder %s426_s18, %s592_s3 }
  0xf7   :  { %p432_p1 = pnand %p430_p0, %p427_p13 }
  0xf9   :  { %435 = shalt.err (!%p432_p1)
}
  0xfa   :  { %346 = dma.vmem_to_hbm [thread:$0]  %s344_s4, 32, %s592_s3, [#allocation5]  }
  0xfb   :  { %436 = dma.done.wait [#allocation3], 32  }
  0xfc   :  { %437 = vsyncadd [#allocation3], 4294967264 }
  0xfd   :  { %438 = dma.done.wait [#allocation5], 32  }
  0xfe   :  { %439 = vsyncadd [#allocation5], 4294967264 }
  0xff   :  { %353 = vsyncpa [#allocation3], 1 }
 0x100   :  { %354 = vsyncpa [#allocation5], 1 }

</bundles_post_ra>
